<compile_context>
chip_gen: v7x
topology: tpu7x:2x2x1
jax: 0.10.0
libtpu: 0.0.40
codegen_flags: <defaults>
</compile_context>

<pallas_src>
import functools

import jax
import jax.numpy as jnp
from jax import lax
from jax.experimental import pallas as pl
from jax.experimental.pallas import tpu as pltpu


def _round_up(x, m):
    return ((x + m - 1) // m) * m


def _largest_divisor_leq(n, k):
    k = max(1, min(n, k))
    while n % k:
        k -= 1
    return k


def conv_block_forward(x_nchw, weight, bias, gamma, beta, *, stride, padding,
                       eps=1e-5, matmul_dtype=jnp.bfloat16,
                       target_rows_p1=512, target_rows_p2=2048):
    """ConvBlock forward: Conv2d -> BatchNorm2d (batch statistics) -> ReLU.

    x_nchw: [N, Cin, H, W]; weight: [Cout, Cin, KH, KW] (PyTorch layouts).
    `bias` is accepted for interface parity but unused: with training-mode
    BatchNorm the conv bias cancels exactly in (y - mean(y)).
    """
    del bias
    # TODO(synk): if this block is ever run in eval mode (running stats), the
    # conv bias must be reinstated and mean/var replaced by the running buffers.

    N, Cin, H, W = map(int, x_nchw.shape)
    Cout, _, KH, KW = map(int, weight.shape)
    S, P = int(stride), int(padding)
    OH = (H + 2 * P - KH) // S + 1
    OW = (W + 2 * P - KW) // S + 1
    count = N * OH * OW                       # true per-channel element count
    n_taps = KH * KW
    itemsize = jnp.dtype(matmul_dtype).itemsize
    y_dtype = matmul_dtype                    # bf16 y halves pass-2 HBM traffic
    y_itemsize = jnp.dtype(y_dtype).itemsize

    # ---- alignment / tiling --------------------------------------------------
    C_pad = _round_up(Cout, 128)              # lane-dense output channels
    TC = 256 if C_pad % 256 == 0 else 128     # MXU-width Cout tiles when possible
    n_c = C_pad // TC
    cin_align = 16 if itemsize == 2 else 8    # dtype sublane packing
    Cin_pad = _round_up(Cin, cin_align)
    OW_pad = _round_up(OW, 16)                # keeps in-kernel reshape a pure relabel

    qh_max = (KH - 1) // S
    qw_max = (KW - 1) // S
    W_phase = OW_pad + qw_max

    try:
        kind = jax.devices()[0].device_kind.lower()
    except Exception:  # pragma: no cover
        kind = ""
    # v5e/v6e have 128 MiB VMEM -> 64 MiB limit; stay conservative elsewhere (v7x: 64 MiB total).
    vmem_limit = (64 << 20) if ("v5" in kind or "v6" in kind) else (48 << 20)
    vmem_budget = int(vmem_limit * 0.6)

    def p1_step_bytes(t_oh):
        # generous VMEM-layout estimate (minor dims padded to the (8/16,128) tile)
        h_phase = _round_up(OH, t_oh) + qh_max
        x_b = S * S * h_phase * _round_up(W_phase, 16) * max(Cin_pad, 128) * itemsize
        w_b = n_taps * _round_up(Cin_pad, 16) * TC * itemsize   # single-buffered
        y_b = t_oh * OW_pad * TC * y_itemsize
        s_b = 8 * TC * 4
        return 2 * x_b + w_b + 2 * (y_b + s_b)

    # Output-row tile: fill the MXU M dim, keep >= 4 grid steps (2 v7x cores),
    # and fit the explicit per-step byte budget.
    T_OH = max(1, min(OH, target_rows_p1 // OW_pad))
    while T_OH > 1 and N * n_c * (-(-OH // T_OH)) < 4:
        T_OH = max(1, T_OH // 2)
    while T_OH > 1 and p1_step_bytes(T_OH) > vmem_budget:
        T_OH = max(1, T_OH // 2)
    # TODO(synk): for very large images the resident whole-image block itself can
    # exceed VMEM; that case needs halo DMA / pl.Element row bands instead.

    OH_pad = _round_up(OH, T_OH)
    n_t = OH_pad // T_OH
    T_M = T_OH * OW_pad
    H_phase = OH_pad + qh_max
    S2 = S * S

    # ---- host-side glue: NCHW -> NHWC, conv padding, stride-phase split ------
    # (no im2col; HBM holds exactly one dense copy of the padded input;
    #  x_ph[n, (rh*S+rw)*H_phase + i, j, c] == padded_input[n, i*S+rh, j*S+rw, c])
    x_nhwc = jnp.transpose(x_nchw, (0, 2, 3, 1)).astype(matmul_dtype)
    H_in, W_in = H_phase * S, W_phase * S
    xp = jnp.pad(x_nhwc, ((0, 0),
                          (P, max(0, H_in - H - P)),
                          (P, max(0, W_in - W - P)),
                          (0, Cin_pad - Cin)))[:, :H_in, :W_in, :]
    x_ph = xp.reshape(N, H_phase, S, W_phase, S, Cin_pad)
    x_ph = jnp.transpose(x_ph, (0, 2, 4, 1, 3, 5)).reshape(
        N, S2 * H_phase, W_phase, Cin_pad)

    # weight -> (KH*KW, Cin_pad, C_pad), matching the tap loop / Cout tiling.
    w_taps = jnp.transpose(weight, (2, 3, 1, 0)).reshape(n_taps, Cin, Cout)
    w_taps = jnp.pad(w_taps, ((0, 0), (0, Cin_pad - Cin),
                              (0, C_pad - Cout))).astype(matmul_dtype)

    mask_needed = (OH_pad != OH) or (OW_pad != OW)

    # ---------- Pass 1: streamed conv matmul + per-tile per-channel stats -----
    def conv_stats_kernel(x_ref, w_ref, y_ref, stat_ref):
        t = pl.program_id(2)
        oh0 = t * T_OH
        acc = jnp.zeros((T_M, TC), jnp.float32)
        for kh in range(KH):
            rh, qh = kh % S, kh // S
            for kw in range(KW):
                rw, qw = kw % S, kw // S
                xs = x_ref[0,
                           pl.ds((rh * S + rw) * H_phase + oh0 + qh, T_OH),
                           pl.ds(qw, OW_pad), :]
                acc = acc + jnp.dot(xs.reshape(T_M, Cin_pad),
                                    w_ref[kh * KW + kw],
                                    preferred_element_type=jnp.float32)
        if mask_needed:
            # rows belonging to OH/OW padding can read real pixels; zero them so
            # they pollute neither the batch statistics nor the stored tile.
            r = lax.broadcasted_iota(jnp.int32, (T_M, 1), 0)
            valid = ((oh0 + r // OW_pad) < OH) & ((r % OW_pad) < OW)
            acc = jnp.where(valid, acc, 0.0)
        y_ref[0] = acc.astype(y_ref.dtype)
        # per-tile per-channel partial sums straight from the f32 accumulator
        stat_ref[0, 0, pl.ds(0, 1), :] = jnp.sum(acc, axis=0, keepdims=True)
        stat_ref[0, 0, pl.ds(1, 1), :] = jnp.sum(acc * acc, axis=0, keepdims=True)

    cparams1 = pltpu.CompilerParams(
        dimension_semantics=("parallel", "parallel", "parallel"),
        vmem_limit_bytes=vmem_limit)
    cost1 = pl.CostEstimate(
        flops=2 * N * OH_pad * OW_pad * Cin_pad * C_pad * n_taps,
        transcendentals=0,
        bytes_accessed=(x_ph.size * itemsize + n_c * w_taps.size * itemsize
                        + N * OH_pad * OW_pad * C_pad * y_itemsize
                        + N * n_t * 2 * C_pad * 4))

    y_pad, stats = pl.pallas_call(
        conv_stats_kernel,
        grid=(N, n_c, n_t),
        in_specs=[
            pl.BlockSpec((1, S2 * H_phase, W_phase, Cin_pad),
                         lambda n, c, t: (n, 0, 0, 0)),
            pl.BlockSpec((n_taps, Cin_pad, TC), lambda n, c, t: (0, 0, c),
                         pipeline_mode=pl.Buffered(1)),   # resident weight: 1 buffer
        ],
        out_specs=[
            pl.BlockSpec((1, T_M, TC), lambda n, c, t: (n, t, c)),
            pl.BlockSpec((1, 1, 2, TC), lambda n, c, t: (n, t, 0, c)),
        ],
        out_shape=(
            jax.ShapeDtypeStruct((N, n_t * T_M, C_pad), y_dtype),
            jax.ShapeDtypeStruct((N, n_t, 2, C_pad), jnp.float32),
        ),
        compiler_params=cparams1,
        cost_estimate=cost1,
    )(x_ph, w_taps)

    # ---- finalize batch statistics + fold BN affine (tiny per-channel math) --
    g_pad = jnp.pad(gamma.astype(jnp.float32), (0, C_pad - Cout))
    b_pad = jnp.pad(beta.astype(jnp.float32), (0, C_pad - Cout))
    col_sum = jnp.sum(stats[:, :, 0, :], axis=(0, 1))
    col_sumsq = jnp.sum(stats[:, :, 1, :], axis=(0, 1))
    mean = col_sum / count
    # E[y^2]-E[y]^2 can cancel when |mean| >> std; clamp keeps rsqrt finite.
    var = jnp.maximum(col_sumsq / count - mean * mean, 0.0)
    scale = (g_pad * lax.rsqrt(var + eps)).reshape(1, C_pad)
    shift = (b_pad - scale[0] * mean).reshape(1, C_pad)

    # ---------- Pass 2: fused per-channel scale/shift + ReLU ------------------
    M2 = N * n_t * T_M
    y_flat = y_pad.reshape(M2, C_pad)

    def p2_step_bytes(rows):
        return 2 * rows * C_pad * (y_itemsize + 4)

    g2 = _largest_divisor_leq(N * n_t, max(1, target_rows_p2 // T_M))
    while g2 > 1 and p2_step_bytes(g2 * T_M) > vmem_budget:
        g2 = _largest_divisor_leq(N * n_t, g2 - 1)
    if N * n_t >= 2 and g2 == N * n_t:        # keep >= 2 steps for both TCs
        g2 = _largest_divisor_leq(N * n_t, max(1, g2 // 2))
    tm2 = g2 * T_M
    n2 = M2 // tm2

    def bn_relu_kernel(y_ref, scale_ref, shift_ref, o_ref):
        y = y_ref[...].astype(jnp.float32)
        o_ref[...] = jnp.maximum(y * scale_ref[...] + shift_ref[...], 0.0)

    cparams2 = pltpu.CompilerParams(
        dimension_semantics=("parallel",), vmem_limit_bytes=vmem_limit)
    cost2 = pl.CostEstimate(
        flops=2 * M2 * C_pad,
        transcendentals=0,
        bytes_accessed=M2 * C_pad * (y_itemsize + 4) + 2 * C_pad * 4)

    out_flat = pl.pallas_call(
        bn_relu_kernel,
        grid=(n2,),
        in_specs=[
            pl.BlockSpec((tm2, C_pad), lambda i: (i, 0)),
            pl.BlockSpec((1, C_pad), lambda i: (0, 0)),
            pl.BlockSpec((1, C_pad), lambda i: (0, 0)),
        ],
        out_specs=pl.BlockSpec((tm2, C_pad), lambda i: (i, 0)),
        out_shape=jax.ShapeDtypeStruct((M2, C_pad), jnp.float32),
        compiler_params=cparams2,
        cost_estimate=cost2,
    )(y_flat, scale, shift)

    out = out_flat.reshape(N, OH_pad, OW_pad, C_pad)[:, :OH, :OW, :Cout]
    # NHWC is the natural lane-dense TPU layout; this final transpose exists only
    # to match the PyTorch NCHW interface (a TPU consumer should take `out` as-is).
    return jnp.transpose(out, (0, 3, 1, 2))


def reference_forward(x, weight, bias, gamma, beta, *, stride, padding, eps=1e-5):
    y = lax.conv_general_dilated(
        x, weight, window_strides=(stride, stride),
        padding=[(padding, padding), (padding, padding)],
        dimension_numbers=("NCHW", "OIHW", "NCHW"))
    y = y + bias.reshape(1, -1, 1, 1)
    mean = jnp.mean(y, axis=(0, 2, 3), keepdims=True)
    var = jnp.mean((y - mean) ** 2, axis=(0, 2, 3), keepdims=True)
    y = (y - mean) * lax.rsqrt(var + eps)
    y = y * gamma.reshape(1, -1, 1, 1) + beta.reshape(1, -1, 1, 1)
    return jnp.maximum(y, 0.0)


if __name__ == "__main__":
    # ConvBlock(in_channels=4, out_channels=8, stride=1, kernel_size=3, padding=1)
    N, Cin, H, W = 2, 4, 16, 16
    Cout, KH, KW = 8, 3, 3
    stride, padding = 1, 1

    key = jax.random.PRNGKey(0)
    kx, kw_, kb = jax.random.split(key, 3)
    x = jax.random.normal(kx, (N, Cin, H, W), dtype=jnp.float32)
    weight = 0.1 * jax.random.normal(kw_, (Cout, Cin, KH, KW), dtype=jnp.float32)
    bias = 0.05 * jax.random.normal(kb, (Cout,), dtype=jnp.float32)
    gamma = jnp.ones((Cout,), dtype=jnp.float32)   # BatchNorm2d default weight
    beta = jnp.zeros((Cout,), dtype=jnp.float32)   # BatchNorm2d default bias

    ref = reference_forward(x, weight, bias, gamma, beta,
                            stride=stride, padding=padding)

    # f32 matmul + f32 y storage -> tight tolerance.
    fwd_f32 = jax.jit(functools.partial(
        conv_block_forward, stride=stride, padding=padding,
        matmul_dtype=jnp.float32))
    out_f32 = jax.block_until_ready(fwd_f32(x, weight, bias, gamma, beta))
    assert out_f32.shape == (N, Cout, H, W)
    assert jnp.allclose(out_f32, ref, atol=5e-4, rtol=5e-4)

    # bf16 matmul + bf16 y storage (MXU-rate operands, f32 accumulation / BN math).
    fwd_bf16 = jax.jit(functools.partial(
        conv_block_forward, stride=stride, padding=padding,
        matmul_dtype=jnp.bfloat16))
    out_bf16 = jax.block_until_ready(fwd_bf16(x, weight, bias, gamma, beta))
    assert out_bf16.shape == (N, Cout, H, W)
    assert jnp.allclose(out_bf16, ref, atol=4e-2, rtol=4e-2)

    print("KERNEL_OK")
</pallas_src>

<mosaic_0001>
module attributes {stable_mosaic.version = 11 : i64} {
  func.func @conv_stats_kernel(%arg0: i32, %arg1: i32, %arg2: i32, %arg3: memref<1x18x18x8xf32, #tpu.memory_space<vmem>>, %arg4: memref<9x8x128xf32, #tpu.memory_space<vmem>>, %arg5: memref<1x128x128xf32, #tpu.memory_space<vmem>>, %arg6: memref<1x1x2x128xf32, #tpu.memory_space<vmem>>) attributes {dimension_semantics = [#tpu.dimension_semantics<parallel>, #tpu.dimension_semantics<parallel>, #tpu.dimension_semantics<parallel>], iteration_bounds = array<i64: 2, 1, 2>, scalar_prefetch = 0 : i64, scratch_operands = 0 : i64, tpu.core_type = #tpu.core_type<tc>, window_params = [{transform_indices = @transform_0, window_bounds = array<i64: 1, 18, 18, 8>}, {pipeline_mode = #tpu.pipeline_mode<synchronous>, transform_indices = @transform_1, window_bounds = array<i64: 9, 8, 128>}, {transform_indices = @transform_2, window_bounds = array<i64: 1, 128, 128>}, {transform_indices = @transform_3, window_bounds = array<i64: 1, 1, 2, 128>}]} {
    %c8_i32 = arith.constant 8 : i32
    %0 = arith.muli %arg2, %c8_i32 : i32
    %cst = arith.constant 0.000000e+00 : f32
    %1 = vector.broadcast %cst : f32 to vector<128x128xf32>
    %c0_i32 = arith.constant 0 : i32
    %2 = arith.addi %c0_i32, %0 : i32
    %c0_i32_0 = arith.constant 0 : i32
    %3 = arith.addi %2, %c0_i32_0 : i32
    %c0 = arith.constant 0 : index
    %4 = arith.index_cast %3 : i32 to index
    %c0_1 = arith.constant 0 : index
    %c0_2 = arith.constant 0 : index
    %5 = vector.load %arg3[%c0, %4, %c0_1, %c0_2] : memref<1x18x18x8xf32, #tpu.memory_space<vmem>>, vector<1x8x16x8xf32>
    %6 = vector.shape_cast %5 : vector<1x8x16x8xf32> to vector<8x16x8xf32>
    %7 = vector.shape_cast %6 : vector<8x16x8xf32> to vector<128x8xf32>
    %c0_3 = arith.constant 0 : index
    %c0_4 = arith.constant 0 : index
    %c0_5 = arith.constant 0 : index
    %8 = vector.load %arg4[%c0_3, %c0_4, %c0_5] : memref<9x8x128xf32, #tpu.memory_space<vmem>>, vector<1x8x128xf32>
    %9 = vector.shape_cast %8 : vector<1x8x128xf32> to vector<8x128xf32>
    %cst_6 = arith.constant dense<0.000000e+00> : vector<128x128xf32>
    %10 = tpu.matmul %7, %9, %cst_6 {dimension_numbers = #tpu.dot_dimension_numbers<[1], [0], [0], [1], [0, 0, 1, 1], [], []>} : vector<128x8xf32>, vector<8x128xf32>, vector<128x128xf32> -> vector<128x128xf32>
    %11 = arith.addf %1, %10 : vector<128x128xf32>
    %c0_i32_7 = arith.constant 0 : i32
    %12 = arith.addi %c0_i32_7, %0 : i32
    %c0_i32_8 = arith.constant 0 : i32
    %13 = arith.addi %12, %c0_i32_8 : i32
    %c0_9 = arith.constant 0 : index
    %14 = arith.index_cast %13 : i32 to index
    %c1 = arith.constant 1 : index
    %c0_10 = arith.constant 0 : index
    %15 = vector.load %arg3[%c0_9, %14, %c1, %c0_10] : memref<1x18x18x8xf32, #tpu.memory_space<vmem>>, vector<1x8x16x8xf32>
    %16 = vector.shape_cast %15 : vector<1x8x16x8xf32> to vector<8x16x8xf32>
    %17 = vector.shape_cast %16 : vector<8x16x8xf32> to vector<128x8xf32>
    %c1_11 = arith.constant 1 : index
    %c0_12 = arith.constant 0 : index
    %c0_13 = arith.constant 0 : index
    %18 = vector.load %arg4[%c1_11, %c0_12, %c0_13] : memref<9x8x128xf32, #tpu.memory_space<vmem>>, vector<1x8x128xf32>
    %19 = vector.shape_cast %18 : vector<1x8x128xf32> to vector<8x128xf32>
    %cst_14 = arith.constant dense<0.000000e+00> : vector<128x128xf32>
    %20 = tpu.matmul %17, %19, %cst_14 {dimension_numbers = #tpu.dot_dimension_numbers<[1], [0], [0], [1], [0, 0, 1, 1], [], []>} : vector<128x8xf32>, vector<8x128xf32>, vector<128x128xf32> -> vector<128x128xf32>
    %21 = arith.addf %11, %20 : vector<128x128xf32>
    %c0_i32_15 = arith.constant 0 : i32
    %22 = arith.addi %c0_i32_15, %0 : i32
    %c0_i32_16 = arith.constant 0 : i32
    %23 = arith.addi %22, %c0_i32_16 : i32
    %c0_17 = arith.constant 0 : index
    %24 = arith.index_cast %23 : i32 to index
    %c2 = arith.constant 2 : index
    %c0_18 = arith.constant 0 : index
    %25 = vector.load %arg3[%c0_17, %24, %c2, %c0_18] : memref<1x18x18x8xf32, #tpu.memory_space<vmem>>, vector<1x8x16x8xf32>
    %26 = vector.shape_cast %25 : vector<1x8x16x8xf32> to vector<8x16x8xf32>
    %27 = vector.shape_cast %26 : vector<8x16x8xf32> to vector<128x8xf32>
    %c2_19 = arith.constant 2 : index
    %c0_20 = arith.constant 0 : index
    %c0_21 = arith.constant 0 : index
    %28 = vector.load %arg4[%c2_19, %c0_20, %c0_21] : memref<9x8x128xf32, #tpu.memory_space<vmem>>, vector<1x8x128xf32>
    %29 = vector.shape_cast %28 : vector<1x8x128xf32> to vector<8x128xf32>
    %cst_22 = arith.constant dense<0.000000e+00> : vector<128x128xf32>
    %30 = tpu.matmul %27, %29, %cst_22 {dimension_numbers = #tpu.dot_dimension_numbers<[1], [0], [0], [1], [0, 0, 1, 1], [], []>} : vector<128x8xf32>, vector<8x128xf32>, vector<128x128xf32> -> vector<128x128xf32>
    %31 = arith.addf %21, %30 : vector<128x128xf32>
    %c0_i32_23 = arith.constant 0 : i32
    %32 = arith.addi %c0_i32_23, %0 : i32
    %c1_i32 = arith.constant 1 : i32
    %33 = arith.addi %32, %c1_i32 : i32
    %c0_24 = arith.constant 0 : index
    %34 = arith.index_cast %33 : i32 to index
    %c0_25 = arith.constant 0 : index
    %c0_26 = arith.constant 0 : index
    %35 = vector.load %arg3[%c0_24, %34, %c0_25, %c0_26] : memref<1x18x18x8xf32, #tpu.memory_space<vmem>>, vector<1x8x16x8xf32>
    %36 = vector.shape_cast %35 : vector<1x8x16x8xf32> to vector<8x16x8xf32>
    %37 = vector.shape_cast %36 : vector<8x16x8xf32> to vector<128x8xf32>
    %c3 = arith.constant 3 : index
    %c0_27 = arith.constant 0 : index
    %c0_28 = arith.constant 0 : index
    %38 = vector.load %arg4[%c3, %c0_27, %c0_28] : memref<9x8x128xf32, #tpu.memory_space<vmem>>, vector<1x8x128xf32>
    %39 = vector.shape_cast %38 : vector<1x8x128xf32> to vector<8x128xf32>
    %cst_29 = arith.constant dense<0.000000e+00> : vector<128x128xf32>
    %40 = tpu.matmul %37, %39, %cst_29 {dimension_numbers = #tpu.dot_dimension_numbers<[1], [0], [0], [1], [0, 0, 1, 1], [], []>} : vector<128x8xf32>, vector<8x128xf32>, vector<128x128xf32> -> vector<128x128xf32>
    %41 = arith.addf %31, %40 : vector<128x128xf32>
    %c0_i32_30 = arith.constant 0 : i32
    %42 = arith.addi %c0_i32_30, %0 : i32
    %c1_i32_31 = arith.constant 1 : i32
    %43 = arith.addi %42, %c1_i32_31 : i32
    %c0_32 = arith.constant 0 : index
    %44 = arith.index_cast %43 : i32 to index
    %c1_33 = arith.constant 1 : index
    %c0_34 = arith.constant 0 : index
    %45 = vector.load %arg3[%c0_32, %44, %c1_33, %c0_34] : memref<1x18x18x8xf32, #tpu.memory_space<vmem>>, vector<1x8x16x8xf32>
    %46 = vector.shape_cast %45 : vector<1x8x16x8xf32> to vector<8x16x8xf32>
    %47 = vector.shape_cast %46 : vector<8x16x8xf32> to vector<128x8xf32>
    %c4 = arith.constant 4 : index
    %c0_35 = arith.constant 0 : index
    %c0_36 = arith.constant 0 : index
    %48 = vector.load %arg4[%c4, %c0_35, %c0_36] : memref<9x8x128xf32, #tpu.memory_space<vmem>>, vector<1x8x128xf32>
    %49 = vector.shape_cast %48 : vector<1x8x128xf32> to vector<8x128xf32>
    %cst_37 = arith.constant dense<0.000000e+00> : vector<128x128xf32>
    %50 = tpu.matmul %47, %49, %cst_37 {dimension_numbers = #tpu.dot_dimension_numbers<[1], [0], [0], [1], [0, 0, 1, 1], [], []>} : vector<128x8xf32>, vector<8x128xf32>, vector<128x128xf32> -> vector<128x128xf32>
    %51 = arith.addf %41, %50 : vector<128x128xf32>
    %c0_i32_38 = arith.constant 0 : i32
    %52 = arith.addi %c0_i32_38, %0 : i32
    %c1_i32_39 = arith.constant 1 : i32
    %53 = arith.addi %52, %c1_i32_39 : i32
    %c0_40 = arith.constant 0 : index
    %54 = arith.index_cast %53 : i32 to index
    %c2_41 = arith.constant 2 : index
    %c0_42 = arith.constant 0 : index
    %55 = vector.load %arg3[%c0_40, %54, %c2_41, %c0_42] : memref<1x18x18x8xf32, #tpu.memory_space<vmem>>, vector<1x8x16x8xf32>
    %56 = vector.shape_cast %55 : vector<1x8x16x8xf32> to vector<8x16x8xf32>
    %57 = vector.shape_cast %56 : vector<8x16x8xf32> to vector<128x8xf32>
    %c5 = arith.constant 5 : index
    %c0_43 = arith.constant 0 : index
    %c0_44 = arith.constant 0 : index
    %58 = vector.load %arg4[%c5, %c0_43, %c0_44] : memref<9x8x128xf32, #tpu.memory_space<vmem>>, vector<1x8x128xf32>
    %59 = vector.shape_cast %58 : vector<1x8x128xf32> to vector<8x128xf32>
    %cst_45 = arith.constant dense<0.000000e+00> : vector<128x128xf32>
    %60 = tpu.matmul %57, %59, %cst_45 {dimension_numbers = #tpu.dot_dimension_numbers<[1], [0], [0], [1], [0, 0, 1, 1], [], []>} : vector<128x8xf32>, vector<8x128xf32>, vector<128x128xf32> -> vector<128x128xf32>
    %61 = arith.addf %51, %60 : vector<128x128xf32>
    %c0_i32_46 = arith.constant 0 : i32
    %62 = arith.addi %c0_i32_46, %0 : i32
    %c2_i32 = arith.constant 2 : i32
    %63 = arith.addi %62, %c2_i32 : i32
    %c0_47 = arith.constant 0 : index
    %64 = arith.index_cast %63 : i32 to index
    %c0_48 = arith.constant 0 : index
    %c0_49 = arith.constant 0 : index
    %65 = vector.load %arg3[%c0_47, %64, %c0_48, %c0_49] : memref<1x18x18x8xf32, #tpu.memory_space<vmem>>, vector<1x8x16x8xf32>
    %66 = vector.shape_cast %65 : vector<1x8x16x8xf32> to vector<8x16x8xf32>
    %67 = vector.shape_cast %66 : vector<8x16x8xf32> to vector<128x8xf32>
    %c6 = arith.constant 6 : index
    %c0_50 = arith.constant 0 : index
    %c0_51 = arith.constant 0 : index
    %68 = vector.load %arg4[%c6, %c0_50, %c0_51] : memref<9x8x128xf32, #tpu.memory_space<vmem>>, vector<1x8x128xf32>
    %69 = vector.shape_cast %68 : vector<1x8x128xf32> to vector<8x128xf32>
    %cst_52 = arith.constant dense<0.000000e+00> : vector<128x128xf32>
    %70 = tpu.matmul %67, %69, %cst_52 {dimension_numbers = #tpu.dot_dimension_numbers<[1], [0], [0], [1], [0, 0, 1, 1], [], []>} : vector<128x8xf32>, vector<8x128xf32>, vector<128x128xf32> -> vector<128x128xf32>
    %71 = arith.addf %61, %70 : vector<128x128xf32>
    %c0_i32_53 = arith.constant 0 : i32
    %72 = arith.addi %c0_i32_53, %0 : i32
    %c2_i32_54 = arith.constant 2 : i32
    %73 = arith.addi %72, %c2_i32_54 : i32
    %c0_55 = arith.constant 0 : index
    %74 = arith.index_cast %73 : i32 to index
    %c1_56 = arith.constant 1 : index
    %c0_57 = arith.constant 0 : index
    %75 = vector.load %arg3[%c0_55, %74, %c1_56, %c0_57] : memref<1x18x18x8xf32, #tpu.memory_space<vmem>>, vector<1x8x16x8xf32>
    %76 = vector.shape_cast %75 : vector<1x8x16x8xf32> to vector<8x16x8xf32>
    %77 = vector.shape_cast %76 : vector<8x16x8xf32> to vector<128x8xf32>
    %c7 = arith.constant 7 : index
    %c0_58 = arith.constant 0 : index
    %c0_59 = arith.constant 0 : index
    %78 = vector.load %arg4[%c7, %c0_58, %c0_59] : memref<9x8x128xf32, #tpu.memory_space<vmem>>, vector<1x8x128xf32>
    %79 = vector.shape_cast %78 : vector<1x8x128xf32> to vector<8x128xf32>
    %cst_60 = arith.constant dense<0.000000e+00> : vector<128x128xf32>
    %80 = tpu.matmul %77, %79, %cst_60 {dimension_numbers = #tpu.dot_dimension_numbers<[1], [0], [0], [1], [0, 0, 1, 1], [], []>} : vector<128x8xf32>, vector<8x128xf32>, vector<128x128xf32> -> vector<128x128xf32>
    %81 = arith.addf %71, %80 : vector<128x128xf32>
    %c0_i32_61 = arith.constant 0 : i32
    %82 = arith.addi %c0_i32_61, %0 : i32
    %c2_i32_62 = arith.constant 2 : i32
    %83 = arith.addi %82, %c2_i32_62 : i32
    %c0_63 = arith.constant 0 : index
    %84 = arith.index_cast %83 : i32 to index
    %c2_64 = arith.constant 2 : index
    %c0_65 = arith.constant 0 : index
    %85 = vector.load %arg3[%c0_63, %84, %c2_64, %c0_65] : memref<1x18x18x8xf32, #tpu.memory_space<vmem>>, vector<1x8x16x8xf32>
    %86 = vector.shape_cast %85 : vector<1x8x16x8xf32> to vector<8x16x8xf32>
    %87 = vector.shape_cast %86 : vector<8x16x8xf32> to vector<128x8xf32>
    %c8 = arith.constant 8 : index
    %c0_66 = arith.constant 0 : index
    %c0_67 = arith.constant 0 : index
    %88 = vector.load %arg4[%c8, %c0_66, %c0_67] : memref<9x8x128xf32, #tpu.memory_space<vmem>>, vector<1x8x128xf32>
    %89 = vector.shape_cast %88 : vector<1x8x128xf32> to vector<8x128xf32>
    %cst_68 = arith.constant dense<0.000000e+00> : vector<128x128xf32>
    %90 = tpu.matmul %87, %89, %cst_68 {dimension_numbers = #tpu.dot_dimension_numbers<[1], [0], [0], [1], [0, 0, 1, 1], [], []>} : vector<128x8xf32>, vector<8x128xf32>, vector<128x128xf32> -> vector<128x128xf32>
    %91 = arith.addf %81, %90 : vector<128x128xf32>
    %c0_69 = arith.constant 0 : index
    %c0_70 = arith.constant 0 : index
    %c0_71 = arith.constant 0 : index
    %92 = vector.load %arg5[%c0_69, %c0_70, %c0_71] : memref<1x128x128xf32, #tpu.memory_space<vmem>>, vector<1x128x128xf32>
    %93 = vector.shape_cast %92 : vector<1x128x128xf32> to vector<128x128xf32>
    %94 = vector.shape_cast %91 : vector<128x128xf32> to vector<1x128x128xf32>
    tpu.vector_store %arg5[%c0_69, %c0_70, %c0_71], %94 {strides = array<i32>} : memref<1x128x128xf32, #tpu.memory_space<vmem>>, vector<1x128x128xf32>,
    %cst_72 = arith.constant dense<0.000000e+00> : vector<128xf32>
    %95 = vector.multi_reduction <add>, %91, %cst_72 [0] : vector<128x128xf32> to vector<128xf32>
    %96 = vector.shape_cast %95 : vector<128xf32> to vector<1x128xf32>
    %c0_73 = arith.constant 0 : index
    %c0_74 = arith.constant 0 : index
    %c0_75 = arith.constant 0 : index
    %c0_76 = arith.constant 0 : index
    %97 = vector.load %arg6[%c0_73, %c0_74, %c0_75, %c0_76] : memref<1x1x2x128xf32, #tpu.memory_space<vmem>>, vector<1x1x1x128xf32>
    %98 = vector.shape_cast %97 : vector<1x1x1x128xf32> to vector<1x128xf32>
    %99 = vector.shape_cast %96 : vector<1x128xf32> to vector<1x1x1x128xf32>
    tpu.vector_store %arg6[%c0_73, %c0_74, %c0_75, %c0_76], %99 {strides = array<i32>} : memref<1x1x2x128xf32, #tpu.memory_space<vmem>>, vector<1x1x1x128xf32>,
    %100 = arith.mulf %91, %91 : vector<128x128xf32>
    %cst_77 = arith.constant dense<0.000000e+00> : vector<128xf32>
    %101 = vector.multi_reduction <add>, %100, %cst_77 [0] : vector<128x128xf32> to vector<128xf32>
    %102 = vector.shape_cast %101 : vector<128xf32> to vector<1x128xf32>
    %c0_78 = arith.constant 0 : index
    %c0_79 = arith.constant 0 : index
    %c1_80 = arith.constant 1 : index
    %c0_81 = arith.constant 0 : index
    %103 = vector.load %arg6[%c0_78, %c0_79, %c1_80, %c0_81] : memref<1x1x2x128xf32, #tpu.memory_space<vmem>>, vector<1x1x1x128xf32>
    %104 = vector.shape_cast %103 : vector<1x1x1x128xf32> to vector<1x128xf32>
    %105 = vector.shape_cast %102 : vector<1x128xf32> to vector<1x1x1x128xf32>
    tpu.vector_store %arg6[%c0_78, %c0_79, %c1_80, %c0_81], %105 {strides = array<i32>} : memref<1x1x2x128xf32, #tpu.memory_space<vmem>>, vector<1x1x1x128xf32>,
    return
  }
  func.func @transform_0(%arg0: i32, %arg1: i32, %arg2: i32) -> (i32, i32, i32, i32) {
    %c0_i32 = arith.constant 0 : i32
    %c0_i32_0 = arith.constant 0 : i32
    %c0_i32_1 = arith.constant 0 : i32
    %c0_i32_2 = arith.constant 0 : i32
    return %arg0, %c0_i32, %c0_i32_0, %c0_i32_1 : i32, i32, i32, i32
  }
  func.func @transform_1(%arg0: i32, %arg1: i32, %arg2: i32) -> (i32, i32, i32) {
    %c0_i32 = arith.constant 0 : i32
    %c0_i32_0 = arith.constant 0 : i32
    %c0_i32_1 = arith.constant 0 : i32
    return %c0_i32, %c0_i32_0, %arg1 : i32, i32, i32
  }
  func.func @transform_2(%arg0: i32, %arg1: i32, %arg2: i32) -> (i32, i32, i32) {
    %c0_i32 = arith.constant 0 : i32
    return %arg0, %arg2, %arg1 : i32, i32, i32
  }
  func.func @transform_3(%arg0: i32, %arg1: i32, %arg2: i32) -> (i32, i32, i32, i32) {
    %c0_i32 = arith.constant 0 : i32
    %c0_i32_0 = arith.constant 0 : i32
    return %arg0, %arg2, %c0_i32, %arg1 : i32, i32, i32, i32
  }
}

module attributes {stable_mosaic.version = 11 : i64} {
  func.func @bn_relu_kernel(%arg0: i32, %arg1: memref<256x128xf32, #tpu.memory_space<vmem>>, %arg2: memref<1x128xf32, #tpu.memory_space<vmem>>, %arg3: memref<1x128xf32, #tpu.memory_space<vmem>>, %arg4: memref<256x128xf32, #tpu.memory_space<vmem>>) attributes {dimension_semantics = [#tpu.dimension_semantics<parallel>], iteration_bounds = array<i64: 2>, scalar_prefetch = 0 : i64, scratch_operands = 0 : i64, tpu.core_type = #tpu.core_type<tc>, window_params = [{transform_indices = @transform_0, window_bounds = array<i64: 256, 128>}, {pipeline_mode = #tpu.pipeline_mode<synchronous>, transform_indices = @transform_1, window_bounds = array<i64: 1, 128>}, {pipeline_mode = #tpu.pipeline_mode<synchronous>, transform_indices = @transform_2, window_bounds = array<i64: 1, 128>}, {transform_indices = @transform_3, window_bounds = array<i64: 256, 128>}]} {
    %c0 = arith.constant 0 : index
    %c0_0 = arith.constant 0 : index
    %0 = vector.load %arg1[%c0, %c0_0] : memref<256x128xf32, #tpu.memory_space<vmem>>, vector<256x128xf32>
    %c0_1 = arith.constant 0 : index
    %c0_2 = arith.constant 0 : index
    %1 = vector.load %arg2[%c0_1, %c0_2] : memref<1x128xf32, #tpu.memory_space<vmem>>, vector<1x128xf32>
    %2 = vector.broadcast %1 : vector<1x128xf32> to vector<256x128xf32>
    %3 = arith.mulf %0, %2 : vector<256x128xf32>
    %c0_3 = arith.constant 0 : index
    %c0_4 = arith.constant 0 : index
    %4 = vector.load %arg3[%c0_3, %c0_4] : memref<1x128xf32, #tpu.memory_space<vmem>>, vector<1x128xf32>
    %5 = vector.broadcast %4 : vector<1x128xf32> to vector<256x128xf32>
    %6 = arith.addf %3, %5 : vector<256x128xf32>
    %cst = arith.constant 0.000000e+00 : f32
    %7 = vector.broadcast %cst : f32 to vector<256x128xf32>
    %8 = arith.maximumf %6, %7 : vector<256x128xf32>
    %c0_5 = arith.constant 0 : index
    %c0_6 = arith.constant 0 : index
    %9 = vector.load %arg4[%c0_5, %c0_6] : memref<256x128xf32, #tpu.memory_space<vmem>>, vector<256x128xf32>
    tpu.vector_store %arg4[%c0_5, %c0_6], %8 {strides = array<i32>} : memref<256x128xf32, #tpu.memory_space<vmem>>, vector<256x128xf32>,
    return
  }
  func.func @transform_0(%arg0: i32) -> (i32, i32) {
    %c0_i32 = arith.constant 0 : i32
    %c0_i32_0 = arith.constant 0 : i32
    return %arg0, %c0_i32 : i32, i32
  }
  func.func @transform_1(%arg0: i32) -> (i32, i32) {
    %c0_i32 = arith.constant 0 : i32
    %c0_i32_0 = arith.constant 0 : i32
    %c0_i32_1 = arith.constant 0 : i32
    return %c0_i32, %c0_i32_0 : i32, i32
  }
  func.func @transform_2(%arg0: i32) -> (i32, i32) {
    %c0_i32 = arith.constant 0 : i32
    %c0_i32_0 = arith.constant 0 : i32
    %c0_i32_1 = arith.constant 0 : i32
    return %c0_i32, %c0_i32_0 : i32, i32
  }
  func.func @transform_3(%arg0: i32) -> (i32, i32) {
    %c0_i32 = arith.constant 0 : i32
    %c0_i32_0 = arith.constant 0 : i32
    return %arg0, %c0_i32 : i32, i32
  }
}

</mosaic_0001>

<bundles_post_ra>
// kernel: conv_block_forward.3
= control target key start
LH: loop header
LB: loop body
LE: loop exit
PB: predicated region body
PF: predicated region fallthrough
CT: control target
= control target key end

     0   :  { %s453_s12 = smov 0   ;;  %s612_s0 = inlined_call_operand.vmem [shape: f32[512,128], index: 0, kind: input, shape index: {}]   ;;  %s613_s1 = inlined_call_operand.vmem [shape: f32[1,128], index: 1, kind: input, shape index: {}]   ;;  %s614_s2 = inlined_call_operand.vmem [shape: f32[1,128], index: 2, kind: input, shape index: {}]   ;;  %s615_s3 = inlined_call_operand.vmem [shape: f32[512,128], index: 3, kind: output, shape index: {}]  }
   0x1 LB: > { %s404_s13 = sadd.s32 4294967295, %s431_s12   ;;  %p408_p0 = scmp.ge.s32.totalorder %s431_s12, 1  ;;  %s431_s12 = sphi %s453_s12, %s13_s12  }
   0x2   : > { %p138_p1 = scmp.lt.s32.totalorder %s431_s12, 3 }
   0x4   : > { %p139_p2 = pnand %p408_p0, %p138_p1 }
   0x5   : > { %s409_s14 = sshll.u32 (!%p139_p2), %s404_s13, 5  ;;  %v464_v0 = vld [vmem:[%s613_s1] ss:$0 sm:$0xff] (!%p139_p2) }
   0x6   : > { %142 = sbr.rel (%p139_p2) target bundleno = 46 (0x2e), region = 32  ;;  %p163_p3 = scmp.lt.s32.totalorder (!%p139_p2), %s409_s14, 63  ;;  %v474_v1 = vld [vmem:[%s614_s2] ss:$0 sm:$0xff] (!%p139_p2) }
   0xd   : > { %s617_s14 = smov (!%p163_p3, %s409_s14), 63 }
   0xe   : > { %s410_s15 = sshll.u32 %s617_s14, 3 }
   0xf   : > { %s469_s20 = scalar_lea.vmem %s612_s0, %s410_s15  ;;  %s497_s25 = scalar_lea.vmem %s615_s3, %s410_s15 }
  0x10   : > { %v174_v2 = vld [vmem:[%s469_s20] sm:$0xff]  ;;  %v175_v3 = vld [vmem:[%s469_s20 + $0x8] sm:$0xff]  ;;  %v176_v4 = vld [vmem:[%s469_s20 + $0x10] sm:$0xff] }
  0x11   : > { %v213_v5 = vmul.f32 %v464_v0, %v174_v2  ;;  %v214_v6 = vmul.f32 %v464_v0, %v175_v3  ;;  %v215_v7 = vmul.f32 %v464_v0, %v176_v4  ;;  %v177_v8 = vld [vmem:[%s469_s20 + $0x18] sm:$0xff]  ;;  %v178_v9 = vld [vmem:[%s469_s20 + $0x20] sm:$0xff]  ;;  %v179_v10 = vld [vmem:[%s469_s20 + $0x28] sm:$0xff] }
  0x12   : > { %v216_v11 = vmul.f32 %v464_v0, %v177_v8  ;;  %v217_v12 = vmul.f32 %v464_v0, %v178_v9  ;;  %v218_v13 = vmul.f32 %v464_v0, %v179_v10  ;;  %v180_v14 = vld [vmem:[%s469_s20 + $0x30] sm:$0xff]  ;;  %v181_v15 = vld [vmem:[%s469_s20 + $0x38] sm:$0xff]  ;;  %v182_v24 = vld [vmem:[%s469_s20 + $0x40] sm:$0xff] }
  0x13   : > { %v252_v16 = vadd.f32 %v474_v1, %v213_v5  ;;  %v253_v17 = vadd.f32 %v474_v1, %v214_v6  ;;  %v254_v18 = vadd.f32 %v474_v1, %v215_v7  ;;  %v219_v19 = vmul.f32 %v464_v0, %v180_v14  ;;  %v183_v25 = vld [vmem:[%s469_s20 + $0x48] sm:$0xff]  ;;  %v184_v26 = vld [vmem:[%s469_s20 + $0x50] sm:$0xff]  ;;  %v185_v31 = vld [vmem:[%s469_s20 + $0x58] sm:$0xff] }
  0x14   : > { %v255_v20 = vadd.f32 %v474_v1, %v216_v11  ;;  %v256_v21 = vadd.f32 %v474_v1, %v217_v12  ;;  %v257_v22 = vadd.f32 %v474_v1, %v218_v13  ;;  %v220_v23 = vmul.f32 %v464_v0, %v181_v15  ;;  %v186_v32 = vld [vmem:[%s469_s20 + $0x60] sm:$0xff]  ;;  %v187_v33 = vld [vmem:[%s469_s20 + $0x68] sm:$0xff]  ;;  %v188_v38 = vld [vmem:[%s469_s20 + $0x70] sm:$0xff] }
  0x15   : > { %v284_v27 = vmax.f32 %v252_v16, 0.0  ;;  %v285_v28 = vmax.f32 %v253_v17, 0.0  ;;  %v286_v29 = vmax.f32 %v254_v18, 0.0  ;;  %v258_v30 = vadd.f32 %v474_v1, %v219_v19  ;;  %v189_v43 = vld [vmem:[%s469_s20 + $0x78] sm:$0xff]  ;;  %v190_v56 = vld [vmem:[%s469_s20 + $0x80] sm:$0xff]  ;;  %v191_v57 = vld [vmem:[%s469_s20 + $0x88] sm:$0xff] }
  0x16   : > { %v287_v34 = vmax.f32 %v255_v20, 0.0  ;;  %v288_v35 = vmax.f32 %v256_v21, 0.0  ;;  %v289_v36 = vmax.f32 %v257_v22, 0.0  ;;  %v259_v37 = vadd.f32 %v474_v1, %v220_v23  ;;  %v192_v58 = vld [vmem:[%s469_s20 + $0x90] sm:$0xff]  ;;  %v193_v63 = vld [vmem:[%s469_s20 + $0x98] sm:$0xff]  ;;  %v194_v2 = vld [vmem:[%s469_s20 + $0xa0] sm:$0xff] }
  0x17   : > { %316 = vst [vmem:[%s497_s25] sm:$0xff] %v284_v27  ;;  %317 = vst [vmem:[%s497_s25 + $0x8] sm:$0xff] %v285_v28  ;;  %v290_v39 = vmax.f32 %v258_v30, 0.0  ;;  %v221_v40 = vmul.f32 %v464_v0, %v182_v24  ;;  %v222_v41 = vmul.f32 %v464_v0, %v183_v25  ;;  %v223_v42 = vmul.f32 %v464_v0, %v184_v26  ;;  %v195_v3 = vld [vmem:[%s469_s20 + $0xa8] sm:$0xff]  ;;  %v196_v8 = vld [vmem:[%s469_s20 + $0xb0] sm:$0xff] }
  0x18   : > { %318 = vst [vmem:[%s497_s25 + $0x10] sm:$0xff] %v286_v29  ;;  %319 = vst [vmem:[%s497_s25 + $0x18] sm:$0xff] %v287_v34  ;;  %v291_v44 = vmax.f32 %v259_v37, 0.0  ;;  %v224_v45 = vmul.f32 %v464_v0, %v185_v31  ;;  %v225_v46 = vmul.f32 %v464_v0, %v186_v32  ;;  %v226_v47 = vmul.f32 %v464_v0, %v187_v33  ;;  %v197_v13 = vld [vmem:[%s469_s20 + $0xb8] sm:$0xff]  ;;  %v198_v26 = vld [vmem:[%s469_s20 + $0xc0] sm:$0xff] }
  0x19   : > { %320 = vst [vmem:[%s497_s25 + $0x20] sm:$0xff] %v288_v35  ;;  %321 = vst [vmem:[%s497_s25 + $0x28] sm:$0xff] %v289_v36  ;;  %v260_v48 = vadd.f32 %v474_v1, %v221_v40  ;;  %v261_v49 = vadd.f32 %v474_v1, %v222_v41  ;;  %v262_v50 = vadd.f32 %v474_v1, %v223_v42  ;;  %v199_v27 = vld [vmem:[%s469_s20 + $0xc8] sm:$0xff]  ;;  %v200_v28 = vld [vmem:[%s469_s20 + $0xd0] sm:$0xff] }
  0x1a   : > { %322 = vst [vmem:[%s497_s25 + $0x30] sm:$0xff] %v290_v39  ;;  %v227_v51 = vmul.f32 %v464_v0, %v188_v38  ;;  %323 = vst [vmem:[%s497_s25 + $0x38] sm:$0xff] %v291_v44  ;;  %v263_v52 = vadd.f32 %v474_v1, %v224_v45  ;;  %v264_v53 = vadd.f32 %v474_v1, %v225_v46  ;;  %v201_v33 = vld [vmem:[%s469_s20 + $0xd8] sm:$0xff]  ;;  %v202_v34 = vld [vmem:[%s469_s20 + $0xe0] sm:$0xff] }
  0x1b   : > { %v265_v54 = vadd.f32 %v474_v1, %v226_v47  ;;  %v228_v55 = vmul.f32 %v464_v0, %v189_v43  ;;  %v292_v59 = vmax.f32 %v260_v48, 0.0  ;;  %v293_v60 = vmax.f32 %v261_v49, 0.0  ;;  %v203_v35 = vld [vmem:[%s469_s20 + $0xe8] sm:$0xff]  ;;  %v204_v40 = vld [vmem:[%s469_s20 + $0xf0] sm:$0xff]  ;;  %v205_v45 = vld [vmem:[%s469_s20 + $0xf8] sm:$0xff] }
  0x1c   : > { %v294_v61 = vmax.f32 %v262_v50, 0.0  ;;  %v266_v62 = vadd.f32 %v474_v1, %v227_v51  ;;  %v295_v4 = vmax.f32 %v263_v52, 0.0  ;;  %v296_v5 = vmax.f32 %v264_v53, 0.0 }
  0x1d   : > { %v297_v6 = vmax.f32 %v265_v54, 0.0  ;;  %v267_v7 = vadd.f32 %v474_v1, %v228_v55  ;;  %324 = vst [vmem:[%s497_s25 + $0x40] sm:$0xff] %v292_v59  ;;  %325 = vst [vmem:[%s497_s25 + $0x48] sm:$0xff] %v293_v60  ;;  %v229_v10 = vmul.f32 %v464_v0, %v190_v56  ;;  %v230_v11 = vmul.f32 %v464_v0, %v191_v57 }
  0x1e   : > { %326 = vst [vmem:[%s497_s25 + $0x50] sm:$0xff] %v294_v61  ;;  %v298_v9 = vmax.f32 %v266_v62, 0.0  ;;  %v231_v12 = vmul.f32 %v464_v0, %v192_v58  ;;  %327 = vst [vmem:[%s497_s25 + $0x58] sm:$0xff] %v295_v4  ;;  %v232_v15 = vmul.f32 %v464_v0, %v193_v63  ;;  %v233_v16 = vmul.f32 %v464_v0, %v194_v2 }
  0x1f   : > { %328 = vst [vmem:[%s497_s25 + $0x60] sm:$0xff] %v296_v5  ;;  %329 = vst [vmem:[%s497_s25 + $0x68] sm:$0xff] %v297_v6  ;;  %v299_v14 = vmax.f32 %v267_v7, 0.0  ;;  %v234_v17 = vmul.f32 %v464_v0, %v195_v3  ;;  %v268_v18 = vadd.f32 %v474_v1, %v229_v10  ;;  %v269_v19 = vadd.f32 %v474_v1, %v230_v11 }
  0x20   : > { %330 = vst [vmem:[%s497_s25 + $0x70] sm:$0xff] %v298_v9  ;;  %v270_v20 = vadd.f32 %v474_v1, %v231_v12  ;;  %v235_v21 = vmul.f32 %v464_v0, %v196_v8  ;;  %v271_v22 = vadd.f32 %v474_v1, %v232_v15  ;;  %v272_v23 = vadd.f32 %v474_v1, %v233_v16 }
  0x21   : > { %331 = vst [vmem:[%s497_s25 + $0x78] sm:$0xff] %v299_v14  ;;  %v273_v24 = vadd.f32 %v474_v1, %v234_v17  ;;  %v236_v25 = vmul.f32 %v464_v0, %v197_v13  ;;  %v300_v29 = vmax.f32 %v268_v18, 0.0  ;;  %v301_v30 = vmax.f32 %v269_v19, 0.0 }
  0x22   : > { %v302_v31 = vmax.f32 %v270_v20, 0.0  ;;  %v274_v32 = vadd.f32 %v474_v1, %v235_v21  ;;  %v303_v36 = vmax.f32 %v271_v22, 0.0  ;;  %v304_v37 = vmax.f32 %v272_v23, 0.0 }
  0x23   : > { %v305_v38 = vmax.f32 %v273_v24, 0.0  ;;  %v275_v39 = vadd.f32 %v474_v1, %v236_v25  ;;  %332 = vst [vmem:[%s497_s25 + $0x80] sm:$0xff] %v300_v29  ;;  %333 = vst [vmem:[%s497_s25 + $0x88] sm:$0xff] %v301_v30  ;;  %v237_v42 = vmul.f32 %v464_v0, %v198_v26  ;;  %v238_v43 = vmul.f32 %v464_v0, %v199_v27 }
  0x24   : > { %334 = vst [vmem:[%s497_s25 + $0x90] sm:$0xff] %v302_v31  ;;  %v306_v41 = vmax.f32 %v274_v32, 0.0  ;;  %v239_v44 = vmul.f32 %v464_v0, %v200_v28  ;;  %335 = vst [vmem:[%s497_s25 + $0x98] sm:$0xff] %v303_v36  ;;  %v240_v47 = vmul.f32 %v464_v0, %v201_v33  ;;  %v241_v48 = vmul.f32 %v464_v0, %v202_v34 }
  0x25   : > { %336 = vst [vmem:[%s497_s25 + $0xa0] sm:$0xff] %v304_v37  ;;  %337 = vst [vmem:[%s497_s25 + $0xa8] sm:$0xff] %v305_v38  ;;  %v307_v46 = vmax.f32 %v275_v39, 0.0  ;;  %v242_v49 = vmul.f32 %v464_v0, %v203_v35  ;;  %v276_v50 = vadd.f32 %v474_v1, %v237_v42  ;;  %v277_v51 = vadd.f32 %v474_v1, %v238_v43 }
  0x26   : > { %338 = vst [vmem:[%s497_s25 + $0xb0] sm:$0xff] %v306_v41  ;;  %v278_v52 = vadd.f32 %v474_v1, %v239_v44  ;;  %v243_v53 = vmul.f32 %v464_v0, %v204_v40  ;;  %v279_v54 = vadd.f32 %v474_v1, %v240_v47  ;;  %v280_v55 = vadd.f32 %v474_v1, %v241_v48 }
  0x27   : > { %339 = vst [vmem:[%s497_s25 + $0xb8] sm:$0xff] %v307_v46  ;;  %v281_v56 = vadd.f32 %v474_v1, %v242_v49  ;;  %v244_v57 = vmul.f32 %v464_v0, %v205_v45  ;;  %v308_v58 = vmax.f32 %v276_v50, 0.0  ;;  %v309_v59 = vmax.f32 %v277_v51, 0.0 }
  0x28   : > { %v310_v60 = vmax.f32 %v278_v52, 0.0  ;;  %v282_v61 = vadd.f32 %v474_v1, %v243_v53  ;;  %v311_v62 = vmax.f32 %v279_v54, 0.0  ;;  %v312_v63 = vmax.f32 %v280_v55, 0.0 }
  0x29   : > { %v313_v2 = vmax.f32 %v281_v56, 0.0  ;;  %v283_v3 = vadd.f32 %v474_v1, %v244_v57  ;;  %340 = vst [vmem:[%s497_s25 + $0xc0] sm:$0xff] %v308_v58  ;;  %341 = vst [vmem:[%s497_s25 + $0xc8] sm:$0xff] %v309_v59 }
  0x2a   : > { %342 = vst [vmem:[%s497_s25 + $0xd0] sm:$0xff] %v310_v60  ;;  %v314_v4 = vmax.f32 %v282_v61, 0.0  ;;  %343 = vst [vmem:[%s497_s25 + $0xd8] sm:$0xff] %v311_v62 }
  0x2b   : > { %344 = vst [vmem:[%s497_s25 + $0xe0] sm:$0xff] %v312_v63  ;;  %345 = vst [vmem:[%s497_s25 + $0xe8] sm:$0xff] %v313_v2  ;;  %v315_v0 = vmax.f32 %v283_v3, 0.0 }
  0x2c   : > { %346 = vst [vmem:[%s497_s25 + $0xf0] sm:$0xff] %v314_v4 }
  0x2d   : > { %347 = vst [vmem:[%s497_s25 + $0xf8] sm:$0xff] %v315_v0 }
  0x2e PF: > { %s13_s12 = sadd.s32 1, %s431_s12  }
  0x2f   : > { %p10_p4 = scmp.ge.s32.totalorder %s13_s12, 4  }
  0x31   :  { %12 = sbr.rel (!%p10_p4) target bundleno = 1 (0x1), region = 62 }

// kernel: conv_block_forward.2
= control target key start
LH: loop header
LB: loop body
LE: loop exit
PB: predicated region body
PF: predicated region fallthrough
CT: control target
= control target key end

     0   :  { %s3416_s12 = smov 0   ;;  %s3418_s13 = smov 0   ;;  %s3954_s0 = inlined_call_operand.vmem [shape: f32[2,18,18,8], index: 0, kind: input, shape index: {}]   ;;  %s3955_s1 = inlined_call_operand.vmem [shape: f32[9,8,128], index: 1, kind: input, shape index: {}]   ;;  %s3956_s2 = inlined_call_operand.vmem [shape: f32[2,256,128], index: 2, kind: output, shape index: {0}]   ;;  %s3957_s3 = inlined_call_operand.vmem [shape: f32[2,2,2,128], index: 3, kind: output, shape index: {1}]  }
   0x1   :  { %s3420_s14 = smov 0   ;;  %s3422_s15 = smov 0  }
   0x2   :  { %s3424_s16 = smov 0  }
   0x3 LB: > { %s26_s17 = sadd.s32 1, %s3386_s14  ;;  %s33_s18 = sadd.s32 1, %s3390_s15  ;;  %s3394_s16 = sphi %s3424_s16, %s14_s16   ;;  %s3390_s15 = sphi %s3422_s15, %s3961_s15   ;;  %s3386_s14 = sphi %s3420_s14, %s3960_s14   ;;  %s3382_s13 = sphi %s3418_s13, %s3959_s13   ;;  %s3378_s12 = sphi %s3416_s12, %s3958_s12  }
   0x4   : > { %p27_p0 = scmp.ge.s32.totalorder %s26_s17, 2  ;;  %p2535_p1 = scmp.ge.s32.totalorder %s3394_s16, 1 }
   0x5   : > { %p176_p2 = scmp.lt.s32.totalorder %s3394_s16, 5 }
   0x6   : > { %s3963_s17 = smov (%p27_p0, %s26_s17), 0  ;;  %s3965_s18 = smov (!%p27_p0, %s33_s18), %s3390_s15 }
   0x7   : > { %p177_p3 = pnand %p2535_p1, %p176_p2  ;;  %p35_p4 = scmp.ge.s32.totalorder %s3965_s18, 2 }
   0x8   : > { %v2544_v0 = vld [vmem:[%s3955_s1 + $0x8] sm:$0xff] (!%p177_p3)  ;;  %v3454_v1 = vld [vmem:[%s3955_s1 + $0x20] sm:$0xff] (!%p177_p3)  ;;  %p222_p5 = scmp.lt.s32.totalorder (!%p177_p3), %s3382_s13, 1  ;;  %s2543_s27 = smul.u32 (!%p177_p3), 192, %s3378_s12  ;;  %vm293_vm0 = vcmask (!%p177_p3), 64512   ;;  %v2713_v9 = vld [vmem:[%s3955_s1 + $0x30] sm:$0xff] (!%p177_p3) }
   0x9   : > { %s3967_s18 = smov (%p35_p4, %s3965_s18), 0  ;;  %180 = sbr.rel (%p177_p3) target bundleno = 397 (0x18d), region = 28 }
   0xa   : > { %v274_v2 = vld [vmem:[%s3955_s1] sm:$0xff] (!%p177_p3)  ;;  %2951 = vmatprep.subr.mxu1 (!%p177_p3), %v2544_v0  ;;  %3055 = vmatprep.subr.mxu0 (!%p177_p3), %v3454_v1  ;;  %v2678_v3 = vld [vmem:[%s3955_s1 + $0x28] sm:$0xff] (!%p177_p3)  ;;  %v3490_v10 = vld [vmem:[%s3955_s1 + $0x10] sm:$0xff] (!%p177_p3)  ;;  %s2537_s23 = sshll.u32 (!%p177_p3), %s3378_s12, 4  ;;  %p246_p7 = scmp.lt.s32.totalorder (!%p177_p3), %s3378_s12, 1 }
   0xb   : > { %2952 = vmatpush3.msra.mxu1 (!%p177_p3), %v2544_v0  ;;  %3056 = vmatpush3.msra.mxu0 (!%p177_p3), %v3454_v1  ;;  %v3549_v20 = vld [vmem:[%s3955_s1 + $0x38] sm:$0xff] (!%p177_p3)  ;;  %v2779_v51 = vld [vmem:[%s3955_s1 + $0x40] sm:$0xff] (!%p177_p3)  ;;  %p234_p6 = scmp.lt.s32.totalorder (!%p177_p3), %s2537_s23, 31 }
   0xc   : > { %2977 = vmatprep.subr.mxu1 (!%p177_p3), %v274_v2  ;;  %3081 = vmatprep.subr.mxu0 (!%p177_p3), %v2678_v3  ;;  %v2612_v37 = vld [vmem:[%s3955_s1 + $0x18] sm:$0xff] (!%p177_p3) }
  0x10   : > { %s3969_s13 = smov (!%p222_p5, %s3382_s13), 1  ;;  %s3971_s23 = smov (!%p234_p6, %s2537_s23), 31 }
  0x11   : > { %s3315_s28 = smul.u32 432, %s3969_s13  ;;  %s2538_s24 = sshll.u32 %s3969_s13, 5 }
  0x12   : > { %s240_s25 = sadd.s32 %s2538_s24, %s3971_s23  ;;  %s3973_s12 = smov (!%p246_p7, %s3378_s12), 1 }
  0x13   : > { %s226_s4 = scalar_lea.vmem %s3954_s0, %s3315_s28  ;;  %s2539_s26 = sshll.u32 %s240_s25, 3 }
  0x14   : > { %s3471_s5 = scalar_lea.vmem %s226_s4, %s2543_s27  ;;  %s3915_s29 = scalar_lea.vmem %s3956_s2, %s2539_s26 }
  0x15   : > { %v275_v4 = vld [vmem:[%s3471_s5 + $0x1] sm:$0xff]  ;;  %v2629_v5 = vld [vmem:[%s3471_s5 + $0x19] sm:$0xff]  ;;  %v276_v6 = vld [vmem:[%s3471_s5 + $0x9] sm:$0xff]  ;;  %s2540_s30 = sshll.u32 %s3969_s13, 1 }
  0x16   : > { %2953 = vmatprep.mubr.msk.f32.mxu1 %vm293_vm0, %v275_v4  ;;  %3057 = vmatprep.mubr.msk.f32.mxu0 %vm293_vm0, %v2629_v5  ;;  %v2630_v7 = vld [vmem:[%s3471_s5 + $0x21] sm:$0xff]  ;;  %v3480_v8 = vld [vmem:[%s3471_s5 + $0x31] sm:$0xff]  ;;  %v3493_v11 = vld [vmem:[%s3471_s5 + $0x39] sm:$0xff]  ;;  %s252_s4 = sadd.s32 %s2540_s30, %s3973_s12 }
  0x17   : > { %2954 = vmatmul.mubr.msk.f32.vlgmr.msra.gmra.mrb[0].mxu1 %vm293_vm0, %v276_v6  ;;  %3058 = vmatmul.mubr.msk.f32.vlgmr.msra.gmra.mrb[0].mxu0 %vm293_vm0, %v2630_v7  ;;  %v3499_v12 = vld [vmem:[%s3471_s5 + $0x49] sm:$0xff]  ;;  %v3510_v13 = vld [vmem:[%s3471_s5 + $0x51] sm:$0xff]  ;;  %v3513_v14 = vld [vmem:[%s3471_s5 + $0x61] sm:$0xff] }
  0x18   : > { %2978 = vmatpush3.msra.mxu1 %v274_v2  ;;  %3082 = vmatpush3.msra.mxu0 %v2678_v3  ;;  %v3524_v15 = vld [vmem:[%s3471_s5 + $0x69] sm:$0xff]  ;;  %v3527_v16 = vld [vmem:[%s3471_s5 + $0x1a] sm:$0xff]  ;;  %v3544_v19 = vld [vmem:[%s3471_s5 + $0x32] sm:$0xff] }
  0x19   : > { %2956 = vmatprep.mubr.msk.f32.mxu1 %vm293_vm0, %v2629_v5  ;;  %3060 = vmatprep.mubr.msk.f32.mxu0 %vm293_vm0, %v3480_v8  ;;  %v3538_v17 = vld [vmem:[%s3471_s5 + $0x22] sm:$0xff]  ;;  %v3541_v18 = vld [vmem:[%s3471_s5 + $0x79] sm:$0xff]  ;;  %v3566_v23 = vld [vmem:[%s3471_s5 + $0x91] sm:$0xff] }
  0x1a   : > { %3107 = vmatprep.subr.mxu0 %v2713_v9  ;;  %3003 = vmatprep.subr.mxu1 %v3490_v10  ;;  %v3558_v21 = vld [vmem:[%s3471_s5 + $0x81] sm:$0xff]  ;;  %v3569_v24 = vld [vmem:[%s3471_s5 + $0x4a] sm:$0xff]  ;;  %v3581_v25 = vld [vmem:[%s3471_s5 + $0x99] sm:$0xff] }
  0x1b   : > { %2957 = vmatmul.mubr.msk.f32.gmra.mrb[2].mxu1 %vm293_vm0, %v2630_v7  ;;  %3061 = vmatmul.mubr.msk.f32.gmra.mrb[2].mxu0 %vm293_vm0, %v3493_v11  ;;  %v3561_v22 = vld [vmem:[%s3471_s5 + $0x3a] sm:$0xff]  ;;  %v3584_v26 = vld [vmem:[%s3471_s5 + $0x52] sm:$0xff]  ;;  %v3587_v27 = vld [vmem:[%s3471_s5 + $0xa9] sm:$0xff] }
  0x1c   : > { %2959 = vmatprep.mubr.msk.f32.mxu1 %vm293_vm0, %v3480_v8  ;;  %3063 = vmatprep.mubr.msk.f32.mxu0 %vm293_vm0, %v3499_v12  ;;  %v3590_v28 = vld [vmem:[%s3471_s5 + $0x62] sm:$0xff]  ;;  %v3601_v29 = vld [vmem:[%s3471_s5 + $0xb1] sm:$0xff]  ;;  %v3608_v32 = vld [vmem:[%s3471_s5 + $0x7a] sm:$0xff] }
  0x1d   : > { %v3604_v30 = vld [vmem:[%s3471_s5 + $0x6a] sm:$0xff]  ;;  %v258_v31 = vld [vmem:[%s3471_s5] sm:$0xff]  ;;  %v3622_v35 = vld [vmem:[%s3471_s5 + $0x18] sm:$0xff] }
  0x1e   : > { %v259_v33 = vld [vmem:[%s3471_s5 + $0x8] sm:$0xff]  ;;  %v3625_v36 = vld [vmem:[%s3471_s5 + $0x92] sm:$0xff]  ;;  %v3637_v38 = vld [vmem:[%s3471_s5 + $0x20] sm:$0xff] }
  0x1f   : > { %2960 = vmatmul.mubr.msk.f32.gmra.mrb[4].mxu1 %vm293_vm0, %v3493_v11  ;;  %3064 = vmatmul.mubr.msk.f32.gmra.mrb[4].mxu0 %vm293_vm0, %v3510_v13  ;;  %v3619_v34 = vld [vmem:[%s3471_s5 + $0x82] sm:$0xff]  ;;  %v3640_v39 = vld [vmem:[%s3471_s5 + $0x9a] sm:$0xff]  ;;  %v3645_v40 = vld [vmem:[%s3471_s5 + $0x30] sm:$0xff] }
  0x20   : > { %2962 = vmatprep.mubr.msk.f32.mxu1 %vm293_vm0, %v3499_v12  ;;  %3066 = vmatprep.mubr.msk.f32.mxu0 %vm293_vm0, %v3513_v14  ;;  %v3648_v41 = vld [vmem:[%s3471_s5 + $0xaa] sm:$0xff]  ;;  %v3659_v42 = vld [vmem:[%s3471_s5 + $0x38] sm:$0xff]  ;;  %v3668_v45 = vld [vmem:[%s3471_s5 + $0xc2] sm:$0xff] }
  0x21   : > { %v3662_v43 = vld [vmem:[%s3471_s5 + $0xb2] sm:$0xff]  ;;  %v3665_v44 = vld [vmem:[%s3471_s5 + $0x48] sm:$0xff]  ;;  %v3685_v48 = vld [vmem:[%s3471_s5 + $0x60] sm:$0xff] }
  0x22   : > { %v3679_v46 = vld [vmem:[%s3471_s5 + $0x50] sm:$0xff]  ;;  %v3696_v49 = vld [vmem:[%s3471_s5 + $0x68] sm:$0xff]  ;;  %v3699_v50 = vld [vmem:[%s3471_s5 + $0x78] sm:$0xff] }
  0x23   : > { %2963 = vmatmul.mubr.msk.f32.gmra.mrb[6].mxu1 %vm293_vm0, %v3510_v13  ;;  %3067 = vmatmul.mubr.msk.f32.gmra.mrb[6].mxu0 %vm293_vm0, %v3524_v15  ;;  %v3682_v47 = vld [vmem:[%s3471_s5 + $0xca] sm:$0xff]  ;;  %v3712_v52 = vld [vmem:[%s3471_s5 + $0x80] sm:$0xff]  ;;  %v3728_v54 = vld [vmem:[%s3471_s5 + $0x98] sm:$0xff] }
  0x24   : > { %2965 = vmatprep.mubr.msk.f32.mxu1 %vm293_vm0, %v3513_v14  ;;  %3083 = vmatprep.mubr.msk.f32.mxu0 %vm293_vm0, %v3527_v16  ;;  %v3717_v53 = vld [vmem:[%s3471_s5 + $0x90] sm:$0xff]  ;;  %v3731_v55 = vld [vmem:[%s3471_s5 + $0xa8] sm:$0xff]  ;;  %v3761_v59 = vld [vmem:[%s3471_s5 + $0xc0] sm:$0xff] }
  0x25   : > { %v3742_v56 = vld [vmem:[%s3471_s5 + $0xb0] sm:$0xff]  ;;  %v680_v57 = vld [vmem:[%s3471_s5 + $0x2] sm:$0xff]  ;;  %v2711_v61 = vld [vmem:[%s3471_s5 + $0xd8] sm:$0xff] }
  0x26   : > { %v681_v58 = vld [vmem:[%s3471_s5 + $0xa] sm:$0xff]  ;;  %v2712_v62 = vld [vmem:[%s3471_s5 + $0xe0] sm:$0xff] }
  0x27   : > { %2966 = vmatmul.mubr.msk.f32.gmra.mrb[8].mxu1 %vm293_vm0, %v3524_v15  ;;  %3084 = vmatmul.mubr.msk.f32.vlgmr.msra.gmra.mrb[0].mxu0 %vm293_vm0, %v3538_v17  ;;  %v2710_v60 = vld [vmem:[%s3471_s5 + $0xc8] sm:$0xff]  ;;  %v2777_v3 = vld [vmem:[%s3471_s5 + $0xda] sm:$0xff] }
  0x28   : > { %3108 = vmatpush3.msra.mxu0 %v2713_v9  ;;  %2968 = vmatprep.mubr.msk.f32.mxu1 %vm293_vm0, %v3541_v18  ;;  %v2742_v63 = vld [vmem:[%s3471_s5 + $0xc1] sm:$0xff]  ;;  %v2743_v0 = vld [vmem:[%s3471_s5 + $0xc9] sm:$0xff] }
  0x29   : > { %3086 = vmatprep.mubr.msk.f32.mxu0 %vm293_vm0, %v3544_v19  ;;  %3133 = vmatprep.subr.mxu0 %v3549_v20  ;;  %v2745_v2 = vld [vmem:[%s3471_s5 + $0xe1] sm:$0xff] }
  0x2a   : > { %v2778_v4 = vld [vmem:[%s3471_s5 + $0xe2] sm:$0xff] }
  0x2b   : > { %2969 = vmatmul.mubr.msk.f32.gmra.mrb[10].mxu1 %vm293_vm0, %v3558_v21  ;;  %3087 = vmatmul.mubr.msk.f32.gmra.mrb[2].mxu0 %vm293_vm0, %v3561_v22 }
  0x2c   : > { %2971 = vmatprep.mubr.msk.f32.mxu1 %vm293_vm0, %v3566_v23  ;;  %3089 = vmatprep.mubr.msk.f32.mxu0 %vm293_vm0, %v3569_v24 }
  0x2f   : > { %2972 = vmatmul.mubr.msk.f32.gmra.mrb[12].mxu1 %vm293_vm0, %v3581_v25  ;;  %3090 = vmatmul.mubr.msk.f32.gmra.mrb[4].mxu0 %vm293_vm0, %v3584_v26 }
  0x30   : > { %2974 = vmatprep.mubr.msk.f32.mxu1 %vm293_vm0, %v3587_v27  ;;  %3092 = vmatprep.mubr.msk.f32.mxu0 %vm293_vm0, %v3590_v28 }
  0x33   : > { %2975 = vmatmul.mubr.msk.f32.gmra.mrb[14].mxu1 %vm293_vm0, %v3601_v29  ;;  %3093 = vmatmul.mubr.msk.f32.gmra.mrb[6].mxu0 %vm293_vm0, %v3604_v30 }
  0x34   : > { %2979 = vmatprep.mubr.msk.f32.mxu1 %vm293_vm0, %v258_v31  ;;  %3095 = vmatprep.mubr.msk.f32.mxu0 %vm293_vm0, %v3608_v32 }
  0x37   : > { %2980 = vmatmul.mubr.msk.f32.vlgmr.msra.gmra.mrb[0].mxu1 %vm293_vm0, %v259_v33  ;;  %3096 = vmatmul.mubr.msk.f32.gmra.mrb[8].mxu0 %vm293_vm0, %v3619_v34 }
  0x38   : > { %3004 = vmatpush3.msra.mxu1 %v3490_v10  ;;  %2982 = vmatprep.mubr.msk.f32.mxu1 %vm293_vm0, %v3622_v35 }
  0x39   : > { %3098 = vmatprep.mubr.msk.f32.mxu0 %vm293_vm0, %v3625_v36  ;;  %3029 = vmatprep.subr.mxu1 %v2612_v37 }
  0x3b   : > { %2983 = vmatmul.mubr.msk.f32.gmra.mrb[2].mxu1 %vm293_vm0, %v3637_v38  ;;  %3099 = vmatmul.mubr.msk.f32.gmra.mrb[10].mxu0 %vm293_vm0, %v3640_v39 }
  0x3c   : > { %2985 = vmatprep.mubr.msk.f32.mxu1 %vm293_vm0, %v3645_v40  ;;  %3101 = vmatprep.mubr.msk.f32.mxu0 %vm293_vm0, %v3648_v41 }
  0x3f   : > { %2986 = vmatmul.mubr.msk.f32.gmra.mrb[4].mxu1 %vm293_vm0, %v3659_v42  ;;  %3102 = vmatmul.mubr.msk.f32.gmra.mrb[12].mxu0 %vm293_vm0, %v3662_v43 }
  0x40   : > { %2988 = vmatprep.mubr.msk.f32.mxu1 %vm293_vm0, %v3665_v44  ;;  %3104 = vmatprep.mubr.msk.f32.mxu0 %vm293_vm0, %v3668_v45 }
  0x43   : > { %2989 = vmatmul.mubr.msk.f32.gmra.mrb[6].mxu1 %vm293_vm0, %v3679_v46  ;;  %3105 = vmatmul.mubr.msk.f32.gmra.mrb[14].mxu0 %vm293_vm0, %v3682_v47 }
  0x44   : > { %2991 = vmatprep.mubr.msk.f32.mxu1 %vm293_vm0, %v3685_v48  ;;  %3109 = vmatprep.mubr.msk.f32.mxu0 %vm293_vm0, %v3645_v40 }
  0x47   : > { %2992 = vmatmul.mubr.msk.f32.gmra.mrb[8].mxu1 %vm293_vm0, %v3696_v49  ;;  %3110 = vmatmul.mubr.msk.f32.vlgmr.msra.gmra.mrb[0].mxu0 %vm293_vm0, %v3659_v42 }
  0x48   : > { %3134 = vmatpush3.msra.mxu0 %v3549_v20  ;;  %2994 = vmatprep.mubr.msk.f32.mxu1 %vm293_vm0, %v3699_v50 }
  0x49   : > { %3112 = vmatprep.mubr.msk.f32.mxu0 %vm293_vm0, %v3665_v44  ;;  %3159 = vmatprep.subr.mxu0 %v2779_v51 }
  0x4b   : > { %2995 = vmatmul.mubr.msk.f32.gmra.mrb[10].mxu1 %vm293_vm0, %v3712_v52  ;;  %3113 = vmatmul.mubr.msk.f32.gmra.mrb[2].mxu0 %vm293_vm0, %v3679_v46 }
  0x4c   : > { %2997 = vmatprep.mubr.msk.f32.mxu1 %vm293_vm0, %v3717_v53  ;;  %3115 = vmatprep.mubr.msk.f32.mxu0 %vm293_vm0, %v3685_v48 }
  0x4f   : > { %2998 = vmatmul.mubr.msk.f32.gmra.mrb[12].mxu1 %vm293_vm0, %v3728_v54  ;;  %3116 = vmatmul.mubr.msk.f32.gmra.mrb[4].mxu0 %vm293_vm0, %v3696_v49 }
  0x50   : > { %3000 = vmatprep.mubr.msk.f32.mxu1 %vm293_vm0, %v3731_v55  ;;  %3118 = vmatprep.mubr.msk.f32.mxu0 %vm293_vm0, %v3699_v50 }
  0x53   : > { %3001 = vmatmul.mubr.msk.f32.gmra.mrb[14].mxu1 %vm293_vm0, %v3742_v56  ;;  %3119 = vmatmul.mubr.msk.f32.gmra.mrb[6].mxu0 %vm293_vm0, %v3712_v52 }
  0x54   : > { %3005 = vmatprep.mubr.msk.f32.mxu1 %vm293_vm0, %v680_v57  ;;  %3121 = vmatprep.mubr.msk.f32.mxu0 %vm293_vm0, %v3717_v53 }
  0x57   : > { %3006 = vmatmul.mubr.msk.f32.vlgmr.msra.gmra.mrb[0].mxu1 %vm293_vm0, %v681_v58  ;;  %3122 = vmatmul.mubr.msk.f32.gmra.mrb[8].mxu0 %vm293_vm0, %v3728_v54 }
  0x58   : > { %3030 = vmatpush3.msra.mxu1 %v2612_v37  ;;  %3008 = vmatprep.mubr.msk.f32.mxu1 %vm293_vm0, %v3527_v16 }
  0x59   : > { %3124 = vmatprep.mubr.msk.f32.mxu0 %vm293_vm0, %v3731_v55  ;;  %3185 = vmatprep.subr.mxu1 %v3454_v1 }
  0x5b   : > { %3009 = vmatmul.mubr.msk.f32.gmra.mrb[2].mxu1 %vm293_vm0, %v3538_v17  ;;  %3125 = vmatmul.mubr.msk.f32.gmra.mrb[10].mxu0 %vm293_vm0, %v3742_v56 }
  0x5c   : > { %3011 = vmatprep.mubr.msk.f32.mxu1 %vm293_vm0, %v3544_v19  ;;  %3127 = vmatprep.mubr.msk.f32.mxu0 %vm293_vm0, %v3761_v59 }
  0x5f   : > { %3012 = vmatmul.mubr.msk.f32.gmra.mrb[4].mxu1 %vm293_vm0, %v3561_v22  ;;  %3128 = vmatmul.mubr.msk.f32.gmra.mrb[12].mxu0 %vm293_vm0, %v2710_v60 }
  0x60   : > { %3014 = vmatprep.mubr.msk.f32.mxu1 %vm293_vm0, %v3569_v24  ;;  %3130 = vmatprep.mubr.msk.f32.mxu0 %vm293_vm0, %v2711_v61 }
  0x63   : > { %3015 = vmatmul.mubr.msk.f32.gmra.mrb[6].mxu1 %vm293_vm0, %v3584_v26  ;;  %3131 = vmatmul.mubr.msk.f32.gmra.mrb[14].mxu0 %vm293_vm0, %v2712_v62 }
  0x64   : > { %3017 = vmatprep.mubr.msk.f32.mxu1 %vm293_vm0, %v3590_v28  ;;  %3135 = vmatprep.mubr.msk.f32.mxu0 %vm293_vm0, %v3480_v8 }
  0x67   : > { %3018 = vmatmul.mubr.msk.f32.gmra.mrb[8].mxu1 %vm293_vm0, %v3604_v30  ;;  %3136 = vmatmul.mubr.msk.f32.vlgmr.msra.gmra.mrb[0].mxu0 %vm293_vm0, %v3493_v11 }
  0x68   : > { %3160 = vmatpush3.msra.mxu0 %v2779_v51  ;;  %3020 = vmatprep.mubr.msk.f32.mxu1 %vm293_vm0, %v3608_v32 }
  0x69   : > { %3138 = vmatprep.mubr.msk.f32.mxu0 %vm293_vm0, %v3499_v12 }
  0x6b   : > { %3021 = vmatmul.mubr.msk.f32.gmra.mrb[10].mxu1 %vm293_vm0, %v3619_v34  ;;  %3139 = vmatmul.mubr.msk.f32.gmra.mrb[2].mxu0 %vm293_vm0, %v3510_v13 }
  0x6c   : > { %3023 = vmatprep.mubr.msk.f32.mxu1 %vm293_vm0, %v3625_v36  ;;  %3141 = vmatprep.mubr.msk.f32.mxu0 %vm293_vm0, %v3513_v14 }
  0x6f   : > { %3024 = vmatmul.mubr.msk.f32.gmra.mrb[12].mxu1 %vm293_vm0, %v3640_v39  ;;  %3142 = vmatmul.mubr.msk.f32.gmra.mrb[4].mxu0 %vm293_vm0, %v3524_v15 }
  0x70   : > { %3026 = vmatprep.mubr.msk.f32.mxu1 %vm293_vm0, %v3648_v41  ;;  %3144 = vmatprep.mubr.msk.f32.mxu0 %vm293_vm0, %v3541_v18 }
  0x73   : > { %3027 = vmatmul.mubr.msk.f32.gmra.mrb[14].mxu1 %vm293_vm0, %v3662_v43  ;;  %3145 = vmatmul.mubr.msk.f32.gmra.mrb[6].mxu0 %vm293_vm0, %v3558_v21 }
  0x74   : > { %3031 = vmatprep.mubr.msk.f32.mxu1 %vm293_vm0, %v3622_v35  ;;  %3147 = vmatprep.mubr.msk.f32.mxu0 %vm293_vm0, %v3566_v23 }
  0x77   : > { %3032 = vmatmul.mubr.msk.f32.vlgmr.msra.gmra.mrb[0].mxu1 %vm293_vm0, %v3637_v38  ;;  %3148 = vmatmul.mubr.msk.f32.gmra.mrb[8].mxu0 %vm293_vm0, %v3581_v25 }
  0x78   : > { %3186 = vmatpush3.msra.mxu1 %v3454_v1  ;;  %3034 = vmatprep.mubr.msk.f32.mxu1 %vm293_vm0, %v3645_v40  ;;  %v2744_v1 = vld [vmem:[%s3471_s5 + $0xd9] sm:$0xff]  ;;  %s2541_s5 = sshll.u32 %s252_s4, 1 }
  0x79   : > { %3150 = vmatprep.mubr.msk.f32.mxu0 %vm293_vm0, %v3587_v27  ;;  %s254_s8 = scalar_lea.vmem %s3957_s3, %s2541_s5 }
  0x7b   : > { %3035 = vmatmul.mubr.msk.f32.gmra.mrb[2].mxu1 %vm293_vm0, %v3659_v42  ;;  %3151 = vmatmul.mubr.msk.f32.gmra.mrb[10].mxu0 %vm293_vm0, %v3601_v29 }
  0x7c   : > { %3037 = vmatprep.mubr.msk.f32.mxu1 %vm293_vm0, %v3665_v44  ;;  %3153 = vmatprep.mubr.msk.f32.mxu0 %vm293_vm0, %v2742_v63 }
  0x7f   : > { %3038 = vmatmul.mubr.msk.f32.gmra.mrb[4].mxu1 %vm293_vm0, %v3679_v46  ;;  %3154 = vmatmul.mubr.msk.f32.gmra.mrb[12].mxu0 %vm293_vm0, %v2743_v0 }
  0x80   : > { %3040 = vmatprep.mubr.msk.f32.mxu1 %vm293_vm0, %v3685_v48  ;;  %3156 = vmatprep.mubr.msk.f32.mxu0 %vm293_vm0, %v2744_v1 }
  0x83   : > { %3041 = vmatmul.mubr.msk.f32.gmra.mrb[6].mxu1 %vm293_vm0, %v3696_v49  ;;  %3157 = vmatmul.mubr.msk.f32.gmra.mrb[14].mxu0 %vm293_vm0, %v2745_v2 }
  0x84   : > { %3043 = vmatprep.mubr.msk.f32.mxu1 %vm293_vm0, %v3699_v50  ;;  %3161 = vmatprep.mubr.msk.f32.mxu0 %vm293_vm0, %v3544_v19 }
  0x87   : > { %3044 = vmatmul.mubr.msk.f32.gmra.mrb[8].mxu1 %vm293_vm0, %v3712_v52  ;;  %3162 = vmatmul.mubr.msk.f32.vlgmr.msra.gmra.mrb[0].mxu0 %vm293_vm0, %v3561_v22 }
  0x88   : > { %3046 = vmatprep.mubr.msk.f32.mxu1 %vm293_vm0, %v3717_v53  ;;  %3164 = vmatprep.mubr.msk.f32.mxu0 %vm293_vm0, %v3569_v24 }
  0x8b   : > { %3047 = vmatmul.mubr.msk.f32.gmra.mrb[10].mxu1 %vm293_vm0, %v3728_v54  ;;  %3165 = vmatmul.mubr.msk.f32.gmra.mrb[2].mxu0 %vm293_vm0, %v3584_v26 }
  0x8c   : > { %3049 = vmatprep.mubr.msk.f32.mxu1 %vm293_vm0, %v3731_v55  ;;  %3167 = vmatprep.mubr.msk.f32.mxu0 %vm293_vm0, %v3590_v28 }
  0x8f   : > { %3050 = vmatmul.mubr.msk.f32.gmra.mrb[12].mxu1 %vm293_vm0, %v3742_v56  ;;  %3168 = vmatmul.mubr.msk.f32.gmra.mrb[4].mxu0 %vm293_vm0, %v3604_v30 }
  0x90   : > { %3052 = vmatprep.mubr.msk.f32.mxu1 %vm293_vm0, %v3761_v59  ;;  %3170 = vmatprep.mubr.msk.f32.mxu0 %vm293_vm0, %v3608_v32 }
  0x93   : > { %3053 = vmatmul.mubr.msk.f32.gmra.mrb[14].mxu1 %vm293_vm0, %v2710_v60  ;;  %3171 = vmatmul.mubr.msk.f32.gmra.mrb[6].mxu0 %vm293_vm0, %v3619_v34 }
  0x94   : > { %3069 = vmatprep.mubr.msk.f32.mxu1 %vm293_vm0, %v3541_v18  ;;  %3173 = vmatprep.mubr.msk.f32.mxu0 %vm293_vm0, %v3625_v36 }
  0x97   : > { %3070 = vmatmul.mubr.msk.f32.vlgmr.msra.gmra.mrb[8].mxu1 %vm293_vm0, %v3558_v21  ;;  %3174 = vmatmul.mubr.msk.f32.gmra.mrb[8].mxu0 %vm293_vm0, %v3640_v39 }
  0x98   : > { %3072 = vmatprep.mubr.msk.f32.mxu1 %vm293_vm0, %v3566_v23  ;;  %3176 = vmatprep.mubr.msk.f32.mxu0 %vm293_vm0, %v3648_v41 }
  0x9b   : > { %3073 = vmatmul.mubr.msk.f32.gmra.mrb[10].mxu1 %vm293_vm0, %v3581_v25  ;;  %3177 = vmatmul.mubr.msk.f32.gmra.mrb[10].mxu0 %vm293_vm0, %v3662_v43 }
  0x9c   : > { %3075 = vmatprep.mubr.msk.f32.mxu1 %vm293_vm0, %v3587_v27  ;;  %3179 = vmatprep.mubr.msk.f32.mxu0 %vm293_vm0, %v3668_v45 }
  0x9f   : > { %3076 = vmatmul.mubr.msk.f32.gmra.mrb[12].mxu1 %vm293_vm0, %v3601_v29  ;;  %3180 = vmatmul.mubr.msk.f32.gmra.mrb[12].mxu0 %vm293_vm0, %v3682_v47 }
  0xa0   : > { %3078 = vmatprep.mubr.msk.f32.mxu1 %vm293_vm0, %v2742_v63  ;;  %3182 = vmatprep.mubr.msk.f32.mxu0 %vm293_vm0, %v2777_v3 }
  0xa3   : > { %3079 = vmatmul.mubr.msk.f32.gmra.mrb[14].mxu1 %vm293_vm0, %v2743_v0  ;;  %3183 = vmatmul.mubr.msk.f32.gmra.mrb[14].mxu0 %vm293_vm0, %v2778_v4 }
 0x14a   : > { %v3033_v5 = vpop.f32.mrb[0].mxu1 }
 0x14b   : > { %v1042_v6 = vpop.f32.mrb[1].mxu1 }
 0x14e   : > { %v3036_v7 = vpop.f32.mrb[2].mxu1 }
 0x14f   : > { %v1052_v8 = vpop.f32.mrb[3].mxu1 }
 0x152   : > { %v3039_v9 = vpop.f32.mrb[4].mxu1 }
 0x153   : > { %v1062_v10 = vpop.f32.mrb[5].mxu1 }
 0x156   : > { %v3042_v11 = vpop.f32.mrb[6].mxu1 }
 0x157   : > { %v1072_v12 = vpop.f32.mrb[7].mxu1 }
 0x15a   : > { %v3163_v13 = vpop.f32.mrb[0].mxu0 }
 0x15b   : > { %v3187_v14 = vadd.f32 %v3163_v13, %v3033_v5  ;;  %v2180_v15 = vpop.f32.mrb[1].mxu0 }
 0x15c   : > { %v3188_v16 = vadd.f32 %v2180_v15, %v1042_v6 }
 0x15d   : > { %2276 = vst [vmem:[%s3915_s29 + $0x8] sm:$0xff] %v3187_v14  ;;  %v2314_v17 = vmul.f32 %v3187_v14, %v3187_v14 }
 0x15e   : > { %2275 = vst [vmem:[%s3915_s29] sm:$0xff] %v3188_v16  ;;  %v2291_v18 = vadd.f32 %v3188_v16, %v3187_v14  ;;  %v2313_v19 = vmul.f32 %v3188_v16, %v3188_v16  ;;  %v3166_v20 = vpop.f32.mrb[2].mxu0 }
 0x15f   : > { %v3189_v21 = vadd.f32 %v3166_v20, %v3036_v7  ;;  %v2190_v22 = vpop.f32.mrb[3].mxu0 }
 0x160   : > { %v2329_v23 = vadd.f32 %v2314_v17, %v2313_v19  ;;  %v3190_v24 = vadd.f32 %v2190_v22, %v1052_v8 }
 0x161   : > { %2278 = vst [vmem:[%s3915_s29 + $0x18] sm:$0xff] %v3189_v21  ;;  %v2316_v30 = vmul.f32 %v3189_v21, %v3189_v21 }
 0x162   : > { %2277 = vst [vmem:[%s3915_s29 + $0x10] sm:$0xff] %v3190_v24  ;;  %v2292_v25 = vadd.f32 %v3190_v24, %v2291_v18  ;;  %v2315_v26 = vmul.f32 %v3190_v24, %v3190_v24  ;;  %v3169_v27 = vpop.f32.mrb[4].mxu0 }
 0x163   : > { %v3191_v28 = vadd.f32 %v3169_v27, %v3039_v9  ;;  %v2200_v29 = vpop.f32.mrb[5].mxu0 }
 0x164   : > { %v2330_v31 = vadd.f32 %v2329_v23, %v2315_v26  ;;  %v3192_v32 = vadd.f32 %v2200_v29, %v1062_v10  ;;  %v2293_v33 = vadd.f32 %v3189_v21, %v2292_v25 }
 0x165   : > { %2280 = vst [vmem:[%s3915_s29 + $0x28] sm:$0xff] %v3191_v28  ;;  %v2318_v40 = vmul.f32 %v3191_v28, %v3191_v28 }
 0x166   : > { %2279 = vst [vmem:[%s3915_s29 + $0x20] sm:$0xff] %v3192_v32  ;;  %v2294_v34 = vadd.f32 %v3192_v32, %v2293_v33  ;;  %v2317_v35 = vmul.f32 %v3192_v32, %v3192_v32  ;;  %v2331_v36 = vadd.f32 %v2330_v31, %v2316_v30  ;;  %v3172_v37 = vpop.f32.mrb[6].mxu0 }
 0x167   : > { %v3193_v38 = vadd.f32 %v3172_v37, %v3042_v11  ;;  %v2210_v39 = vpop.f32.mrb[7].mxu0 }
 0x168   : > { %v2332_v41 = vadd.f32 %v2331_v36, %v2317_v35  ;;  %v3194_v42 = vadd.f32 %v2210_v39, %v1072_v12  ;;  %v2295_v43 = vadd.f32 %v3191_v28, %v2294_v34 }
 0x169   : > { %2282 = vst [vmem:[%s3915_s29 + $0x38] sm:$0xff] %v3193_v38  ;;  %v2320_v52 = vmul.f32 %v3193_v38, %v3193_v38 }
 0x16a   : > { %2281 = vst [vmem:[%s3915_s29 + $0x30] sm:$0xff] %v3194_v42  ;;  %v2296_v44 = vadd.f32 %v3194_v42, %v2295_v43  ;;  %v2319_v45 = vmul.f32 %v3194_v42, %v3194_v42  ;;  %v2333_v46 = vadd.f32 %v2332_v41, %v2318_v40  ;;  %v3071_v47 = vpop.f32.mrb[8].mxu1  ;;  %v3175_v48 = vpop.f32.mrb[8].mxu0 }
 0x16b   : > { %v3195_v49 = vadd.f32 %v3175_v48, %v3071_v47  ;;  %v1309_v50 = vpop.f32.mrb[9].mxu1  ;;  %v2220_v51 = vpop.f32.mrb[9].mxu0 }
 0x16c   : > { %v2334_v53 = vadd.f32 %v2333_v46, %v2319_v45  ;;  %v3196_v54 = vadd.f32 %v2220_v51, %v1309_v50  ;;  %v2297_v55 = vadd.f32 %v3193_v38, %v2296_v44 }
 0x16d   : > { %2284 = vst [vmem:[%s3915_s29 + $0x48] sm:$0xff] %v3195_v49  ;;  %v2322_v0 = vmul.f32 %v3195_v49, %v3195_v49 }
 0x16e   : > { %2283 = vst [vmem:[%s3915_s29 + $0x40] sm:$0xff] %v3196_v54  ;;  %v2298_v56 = vadd.f32 %v3196_v54, %v2297_v55  ;;  %v2321_v57 = vmul.f32 %v3196_v54, %v3196_v54  ;;  %v2335_v58 = vadd.f32 %v2334_v53, %v2320_v52  ;;  %v3074_v59 = vpop.f32.mrb[10].mxu1  ;;  %v3178_v60 = vpop.f32.mrb[10].mxu0 }
 0x16f   : > { %v3197_v61 = vadd.f32 %v3178_v60, %v3074_v59  ;;  %v1319_v62 = vpop.f32.mrb[11].mxu1  ;;  %v2230_v63 = vpop.f32.mrb[11].mxu0 }
 0x170   : > { %v2336_v1 = vadd.f32 %v2335_v58, %v2321_v57  ;;  %v3198_v2 = vadd.f32 %v2230_v63, %v1319_v62  ;;  %v2299_v3 = vadd.f32 %v3195_v49, %v2298_v56 }
 0x171   : > { %2286 = vst [vmem:[%s3915_s29 + $0x58] sm:$0xff] %v3197_v61  ;;  %v2324_v12 = vmul.f32 %v3197_v61, %v3197_v61 }
 0x172   : > { %2285 = vst [vmem:[%s3915_s29 + $0x50] sm:$0xff] %v3198_v2  ;;  %v2300_v4 = vadd.f32 %v3198_v2, %v2299_v3  ;;  %v2323_v5 = vmul.f32 %v3198_v2, %v3198_v2  ;;  %v2337_v6 = vadd.f32 %v2336_v1, %v2322_v0  ;;  %v3077_v7 = vpop.f32.mrb[12].mxu1  ;;  %v3181_v8 = vpop.f32.mrb[12].mxu0 }
 0x173   : > { %v3199_v9 = vadd.f32 %v3181_v8, %v3077_v7  ;;  %v1329_v10 = vpop.f32.mrb[13].mxu1  ;;  %v2240_v11 = vpop.f32.mrb[13].mxu0 }
 0x174   : > { %v2338_v13 = vadd.f32 %v2337_v6, %v2323_v5  ;;  %v3200_v14 = vadd.f32 %v2240_v11, %v1329_v10  ;;  %v2301_v15 = vadd.f32 %v3197_v61, %v2300_v4 }
 0x175   : > { %2288 = vst [vmem:[%s3915_s29 + $0x68] sm:$0xff] %v3199_v9  ;;  %v2326_v24 = vmul.f32 %v3199_v9, %v3199_v9 }
 0x176   : > { %2287 = vst [vmem:[%s3915_s29 + $0x60] sm:$0xff] %v3200_v14  ;;  %v2302_v16 = vadd.f32 %v3200_v14, %v2301_v15  ;;  %v2325_v17 = vmul.f32 %v3200_v14, %v3200_v14  ;;  %v2339_v18 = vadd.f32 %v2338_v13, %v2324_v12  ;;  %v3080_v19 = vpop.f32.mrb[14].mxu1  ;;  %v3184_v20 = vpop.f32.mrb[14].mxu0 }
 0x177   : > { %v3201_v21 = vadd.f32 %v3184_v20, %v3080_v19  ;;  %v1339_v22 = vpop.f32.mrb[15].mxu1  ;;  %v2250_v23 = vpop.f32.mrb[15].mxu0 }
 0x178   : > { %v2340_v25 = vadd.f32 %v2339_v18, %v2325_v17  ;;  %v3202_v26 = vadd.f32 %v2250_v23, %v1339_v22  ;;  %v2303_v27 = vadd.f32 %v3199_v9, %v2302_v16 }
 0x179   : > { %2290 = vst [vmem:[%s3915_s29 + $0x78] sm:$0xff] %v3201_v21  ;;  %v2328_v31 = vmul.f32 %v3201_v21, %v3201_v21 }
 0x17a   : > { %2289 = vst [vmem:[%s3915_s29 + $0x70] sm:$0xff] %v3202_v26  ;;  %v2304_v28 = vadd.f32 %v3202_v26, %v2303_v27  ;;  %v2327_v29 = vmul.f32 %v3202_v26, %v3202_v26  ;;  %v2341_v30 = vadd.f32 %v2340_v25, %v2326_v24 }
 0x17c   : > { %v2305_v32 = vadd.f32 %v3201_v21, %v2304_v28  ;;  %v2342_v33 = vadd.f32 %v2341_v30, %v2327_v29 }
 0x17e   : > { %v2306_v34 = vrot.slane %v2305_v32, 4  ;;  %v2343_v35 = vadd.f32 %v2342_v33, %v2328_v31 }
 0x180   : > { %v2307_v36 = vadd.f32 %v2306_v34, %v2305_v32  ;;  %v2344_v37 = vrot.slane %v2343_v35, 4 }
 0x182   : > { %v2308_v38 = vrot.slane %v2307_v36, 2  ;;  %v2345_v39 = vadd.f32 %v2344_v37, %v2343_v35 }
 0x184   : > { %v2309_v40 = vadd.f32 %v2308_v38, %v2307_v36  ;;  %v2346_v41 = vrot.slane %v2345_v39, 2 }
 0x186   : > { %v2310_v42 = vrot.slane %v2309_v40, 1  ;;  %v2347_v43 = vadd.f32 %v2346_v41, %v2345_v39 }
 0x188   : > { %v2311_v44 = vadd.f32 %v2310_v42, %v2309_v40  ;;  %v2348_v45 = vrot.slane %v2347_v43, 1 }
 0x18a   : > { %2312 = vst [vmem:[%s254_s8] sm:$0x1] %v2311_v44  ;;  %v2349_v46 = vadd.f32 %v2348_v45, %v2347_v43 }
 0x18c   : > { %2350 = vst [vmem:[%s254_s8 + $0x1] sm:$0x1] %v2349_v46 }
 0x18d PF: > { %s14_s16 = sadd.s32 1, %s3394_s16   ;;  %s3958_s12 = smov %s3386_s14 }
 0x18e   : > { %p11_p8 = scmp.ge.s32.totalorder %s14_s16, 6   ;;  %s3959_s13 = smov %s3390_s15 }
 0x18f   : > { %s3960_s14 = smov %s3963_s17  ;;  %s3961_s15 = smov %s3967_s18 }
 0x190   :  { %13 = sbr.rel (!%p11_p8) target bundleno = 3 (0x3), region = 84 }

</bundles_post_ra>
